<compile_context>
chip_gen: v5e
topology: v5e:2x2
jax: 0.10.0
libtpu: 0.0.40
codegen_flags: <defaults>
</compile_context>

<pallas_src>
import jax
import jax.numpy as jnp
from jax.experimental import pallas as pl
from jax.experimental.pallas import tpu as pltpu

LANE = 128
SUBLANE = 8


def _round_up(x: int, m: int) -> int:
    return (x + m - 1) // m * m


def make_mlp_kernel(n_layers: int, d_in: int):
    """Build the fused MLP kernel.

    refs:
      x_ref [tile_b, d_in]  bf16
      w_ref [L, P, P]       bf16 (zero-padded; action_scale folded into layer L-1)
      b_ref [L, 1, P]       f32  (zero-padded; action_scale folded into layer L-1)
      o_ref [tile_b, P]     f32
    """

    def kernel(x_ref, w_ref, b_ref, o_ref):
        # First layer: only the first d_in rows of w_ref[0] are meaningful.
        # d_in is padded wrapper-side to a multiple of 16 so this ref slice is
        # aligned to bf16 sublane packing.
        h = jnp.dot(x_ref[...], w_ref[0, :d_in, :],
                    preferred_element_type=jnp.float32) + b_ref[0]
        for i in range(1, n_layers):
            h = jnp.maximum(h, 0.0)                      # ReLU on hidden layers only
            h = jnp.dot(h.astype(w_ref.dtype), w_ref[i],
                        preferred_element_type=jnp.float32) + b_ref[i]
        o_ref[...] = h.astype(o_ref.dtype)               # no output activation

    return kernel


def pack_mlp_params(params, action_scale: float = 1.0, param_dtype=jnp.bfloat16):
    """Pack per-layer (W [in, out], b [1, out]) into padded, stacked slabs.

    Zero padding is exact: ReLU(0) = 0 and zero weights/rows contribute nothing.
    action_scale is folded into the final layer so the kernel needs no scalar.
    Returns (w_slab [L, P, P], b_slab [L, 1, P], d_in, d_out, P).
    """
    n_layers = len(params)
    d_in = params[0][0].shape[0]
    d_out = params[-1][0].shape[1]
    dims = [d_in] + [w.shape[1] for (w, _) in params]
    pdim = max(_round_up(d, LANE) for d in dims)

    w_slab = jnp.zeros((n_layers, pdim, pdim), jnp.float32)
    b_slab = jnp.zeros((n_layers, 1, pdim), jnp.float32)
    for i, (w, b) in enumerate(params):
        scale = action_scale if i == n_layers - 1 else 1.0
        b2 = jnp.reshape(b, (1, -1))
        w_slab = w_slab.at[i, : w.shape[0], : w.shape[1]].set(w * scale)
        b_slab = b_slab.at[i, :, : b2.shape[1]].set(b2 * scale)
    return w_slab.astype(param_dtype), b_slab, d_in, d_out, pdim


def mlp_forward(x, w_slab, b_slab, d_in, d_out, pdim, *, tile_b: int = 1024):
    """Run the fused MLP Pallas kernel. x: [B, d_in] f32 -> [B, d_out] f32."""
    B = x.shape[0]
    n_layers = w_slab.shape[0]

    # bf16 activations; pad feature dim so the first-layer weight slice is
    # sublane-aligned (no-op when d_in is already a multiple of 16).
    d_in_p = _round_up(d_in, 16)
    x_p = x.astype(w_slab.dtype)
    if d_in_p != d_in:
        x_p = jnp.pad(x_p, ((0, 0), (0, d_in_p - d_in)))

    # Batch tiling: sublane-aligned tile, batch padded up to a tile multiple.
    tile_b = min(tile_b, _round_up(max(B, 1), SUBLANE))
    b_pad = _round_up(B, tile_b)
    if b_pad != B:
        x_p = jnp.pad(x_p, ((0, b_pad - B), (0, 0)))

    grid = (b_pad // tile_b,)
    kernel = make_mlp_kernel(n_layers, d_in_p)

    out = pl.pallas_call(
        kernel,
        out_shape=jax.ShapeDtypeStruct((b_pad, pdim), jnp.float32),
        grid=grid,
        in_specs=[
            pl.BlockSpec((tile_b, d_in_p), lambda i: (i, 0)),
            pl.BlockSpec((n_layers, pdim, pdim), lambda i: (0, 0, 0)),  # resident
            pl.BlockSpec((n_layers, 1, pdim), lambda i: (0, 0, 0)),     # resident
        ],
        out_specs=pl.BlockSpec((tile_b, pdim), lambda i: (i, 0)),
        compiler_params=pltpu.CompilerParams(
            dimension_semantics=("parallel",),
        ),
    )(x_p, w_slab, b_slab)

    return out[:B, :d_out]


def init_mlp_params(key, layers_sizes):
    """PyTorch-style init (U[-1/sqrt(fan_in), 1/sqrt(fan_in)]), mirroring the
    module's layer construction."""
    pairs = list(zip(layers_sizes, layers_sizes[1:-1]))
    pairs.append((layers_sizes[-2], layers_sizes[-1]))

    params = []
    for (fan_in, fan_out) in pairs:
        key, wk, bk = jax.random.split(key, 3)
        bound = 1.0 / jnp.sqrt(fan_in)
        w = jax.random.uniform(wk, (fan_in, fan_out), jnp.float32, -bound, bound)
        b = jax.random.uniform(bk, (1, fan_out), jnp.float32, -bound, bound)
        params.append((w, b))
    return params


def mlp_reference(x, params, action_scale, compute_dtype=jnp.float32):
    """Plain-JAX reference. With compute_dtype=bf16 it mirrors the kernel's
    bf16-matmul / f32-accumulate numerics (scale folded into the last layer)."""
    n_layers = len(params)
    h = x.astype(compute_dtype)
    for i, (w, b) in enumerate(params):
        scale = action_scale if i == n_layers - 1 else 1.0
        w_c = (w * scale).astype(compute_dtype)
        b_c = jnp.reshape(b, (1, -1)) * scale
        h = jnp.dot(h, w_c, preferred_element_type=jnp.float32) + b_c
        if i < n_layers - 1:
            h = jnp.maximum(h, 0.0).astype(compute_dtype)
    return h.astype(jnp.float32)


if __name__ == "__main__":
    key = jax.random.PRNGKey(0)

    layers_sizes = [16, 32, 32, 8]   # obs_dim=16, two hidden layers of 32, action_dim=8
    action_scale = 1.5

    key, pkey = jax.random.split(key)
    params = init_mlp_params(pkey, layers_sizes)
    w_slab, b_slab, d_in, d_out, pdim = pack_mlp_params(params, action_scale)

    # Small batch (typical RL single-observation use).
    key, xk = jax.random.split(key)
    x_small = jax.random.normal(xk, (2, layers_sizes[0]), jnp.float32)
    out_small = jax.block_until_ready(
        mlp_forward(x_small, w_slab, b_slab, d_in, d_out, pdim))
    assert out_small.shape == (2, layers_sizes[-1])

    ref_bf16 = mlp_reference(x_small, params, action_scale, compute_dtype=jnp.bfloat16)
    ref_f32 = mlp_reference(x_small, params, action_scale, compute_dtype=jnp.float32)
    assert jnp.allclose(out_small, ref_bf16, atol=1e-3, rtol=1e-3), "mismatch vs bf16 ref"
    assert jnp.allclose(out_small, ref_f32, atol=5e-2, rtol=5e-2), "mismatch vs f32 ref"

    # Larger non-aligned batch: exercises batch grid (3 tiles) + padding path.
    key, xk = jax.random.split(key)
    x_big = jax.random.normal(xk, (300, layers_sizes[0]), jnp.float32)
    out_big = jax.block_until_ready(
        mlp_forward(x_big, w_slab, b_slab, d_in, d_out, pdim, tile_b=128))
    ref_big = mlp_reference(x_big, params, action_scale, compute_dtype=jnp.bfloat16)
    assert out_big.shape == (300, layers_sizes[-1])
    assert jnp.allclose(out_big, ref_big, atol=1e-3, rtol=1e-3), "mismatch vs bf16 ref (big batch)"

    print("KERNEL_OK")
</pallas_src>

<mosaic_0001>
module attributes {stable_mosaic.version = 11 : i64} {
  func.func @kernel(%arg0: i32, %arg1: memref<8x16xbf16, #tpu.memory_space<vmem>>, %arg2: memref<3x128x128xbf16, #tpu.memory_space<vmem>>, %arg3: memref<3x1x128xf32, #tpu.memory_space<vmem>>, %arg4: memref<8x128xf32, #tpu.memory_space<vmem>>) attributes {dimension_semantics = [#tpu.dimension_semantics<parallel>], iteration_bounds = array<i64: 1>, scalar_prefetch = 0 : i64, scratch_operands = 0 : i64, tpu.core_type = #tpu.core_type<tc>, window_params = [{transform_indices = @transform_0, window_bounds = array<i64: 8, 16>}, {pipeline_mode = #tpu.pipeline_mode<synchronous>, transform_indices = @transform_1, window_bounds = array<i64: 3, 128, 128>}, {pipeline_mode = #tpu.pipeline_mode<synchronous>, transform_indices = @transform_2, window_bounds = array<i64: 3, 1, 128>}, {transform_indices = @transform_3, window_bounds = array<i64: 8, 128>}]} {
    %c0 = arith.constant 0 : index
    %c0_0 = arith.constant 0 : index
    %0 = vector.load %arg1[%c0, %c0_0] : memref<8x16xbf16, #tpu.memory_space<vmem>>, vector<8x16xbf16>
    %c0_1 = arith.constant 0 : index
    %c0_2 = arith.constant 0 : index
    %c0_3 = arith.constant 0 : index
    %1 = vector.load %arg2[%c0_1, %c0_2, %c0_3] : memref<3x128x128xbf16, #tpu.memory_space<vmem>>, vector<1x16x128xbf16>
    %2 = vector.shape_cast %1 : vector<1x16x128xbf16> to vector<16x128xbf16>
    %cst = arith.constant dense<0.000000e+00> : vector<8x128xf32>
    %3 = tpu.matmul %0, %2, %cst {dimension_numbers = #tpu.dot_dimension_numbers<[1], [0], [0], [1], [0, 0, 1, 1], [], []>} : vector<8x16xbf16>, vector<16x128xbf16>, vector<8x128xf32> -> vector<8x128xf32>
    %c0_4 = arith.constant 0 : index
    %c0_5 = arith.constant 0 : index
    %c0_6 = arith.constant 0 : index
    %4 = vector.load %arg3[%c0_4, %c0_5, %c0_6] : memref<3x1x128xf32, #tpu.memory_space<vmem>>, vector<1x1x128xf32>
    %5 = vector.shape_cast %4 : vector<1x1x128xf32> to vector<1x128xf32>
    %6 = vector.broadcast %5 : vector<1x128xf32> to vector<8x128xf32>
    %7 = arith.addf %3, %6 : vector<8x128xf32>
    %cst_7 = arith.constant 0.000000e+00 : f32
    %8 = vector.broadcast %cst_7 : f32 to vector<8x128xf32>
    %9 = arith.maximumf %7, %8 : vector<8x128xf32>
    %10 = arith.truncf %9 : vector<8x128xf32> to vector<8x128xbf16>
    %c1 = arith.constant 1 : index
    %c0_8 = arith.constant 0 : index
    %c0_9 = arith.constant 0 : index
    %11 = vector.load %arg2[%c1, %c0_8, %c0_9] : memref<3x128x128xbf16, #tpu.memory_space<vmem>>, vector<1x128x128xbf16>
    %12 = vector.shape_cast %11 : vector<1x128x128xbf16> to vector<128x128xbf16>
    %cst_10 = arith.constant dense<0.000000e+00> : vector<8x128xf32>
    %13 = tpu.matmul %10, %12, %cst_10 {dimension_numbers = #tpu.dot_dimension_numbers<[1], [0], [0], [1], [0, 0, 1, 1], [], []>} : vector<8x128xbf16>, vector<128x128xbf16>, vector<8x128xf32> -> vector<8x128xf32>
    %c1_11 = arith.constant 1 : index
    %c0_12 = arith.constant 0 : index
    %c0_13 = arith.constant 0 : index
    %14 = vector.load %arg3[%c1_11, %c0_12, %c0_13] : memref<3x1x128xf32, #tpu.memory_space<vmem>>, vector<1x1x128xf32>
    %15 = vector.shape_cast %14 : vector<1x1x128xf32> to vector<1x128xf32>
    %16 = vector.broadcast %15 : vector<1x128xf32> to vector<8x128xf32>
    %17 = arith.addf %13, %16 : vector<8x128xf32>
    %cst_14 = arith.constant 0.000000e+00 : f32
    %18 = vector.broadcast %cst_14 : f32 to vector<8x128xf32>
    %19 = arith.maximumf %17, %18 : vector<8x128xf32>
    %20 = arith.truncf %19 : vector<8x128xf32> to vector<8x128xbf16>
    %c2 = arith.constant 2 : index
    %c0_15 = arith.constant 0 : index
    %c0_16 = arith.constant 0 : index
    %21 = vector.load %arg2[%c2, %c0_15, %c0_16] : memref<3x128x128xbf16, #tpu.memory_space<vmem>>, vector<1x128x128xbf16>
    %22 = vector.shape_cast %21 : vector<1x128x128xbf16> to vector<128x128xbf16>
    %cst_17 = arith.constant dense<0.000000e+00> : vector<8x128xf32>
    %23 = tpu.matmul %20, %22, %cst_17 {dimension_numbers = #tpu.dot_dimension_numbers<[1], [0], [0], [1], [0, 0, 1, 1], [], []>} : vector<8x128xbf16>, vector<128x128xbf16>, vector<8x128xf32> -> vector<8x128xf32>
    %c2_18 = arith.constant 2 : index
    %c0_19 = arith.constant 0 : index
    %c0_20 = arith.constant 0 : index
    %24 = vector.load %arg3[%c2_18, %c0_19, %c0_20] : memref<3x1x128xf32, #tpu.memory_space<vmem>>, vector<1x1x128xf32>
    %25 = vector.shape_cast %24 : vector<1x1x128xf32> to vector<1x128xf32>
    %26 = vector.broadcast %25 : vector<1x128xf32> to vector<8x128xf32>
    %27 = arith.addf %23, %26 : vector<8x128xf32>
    %c0_21 = arith.constant 0 : index
    %c0_22 = arith.constant 0 : index
    %28 = vector.load %arg4[%c0_21, %c0_22] : memref<8x128xf32, #tpu.memory_space<vmem>>, vector<8x128xf32>
    tpu.vector_store %arg4[%c0_21, %c0_22], %27 {strides = array<i32>} : memref<8x128xf32, #tpu.memory_space<vmem>>, vector<8x128xf32>,
    return
  }
  func.func @transform_0(%arg0: i32) -> (i32, i32) {
    %c0_i32 = arith.constant 0 : i32
    %c0_i32_0 = arith.constant 0 : i32
    return %arg0, %c0_i32 : i32, i32
  }
  func.func @transform_1(%arg0: i32) -> (i32, i32, i32) {
    %c0_i32 = arith.constant 0 : i32
    %c0_i32_0 = arith.constant 0 : i32
    %c0_i32_1 = arith.constant 0 : i32
    %c0_i32_2 = arith.constant 0 : i32
    return %c0_i32, %c0_i32_0, %c0_i32_1 : i32, i32, i32
  }
  func.func @transform_2(%arg0: i32) -> (i32, i32, i32) {
    %c0_i32 = arith.constant 0 : i32
    %c0_i32_0 = arith.constant 0 : i32
    %c0_i32_1 = arith.constant 0 : i32
    %c0_i32_2 = arith.constant 0 : i32
    return %c0_i32, %c0_i32_0, %c0_i32_1 : i32, i32, i32
  }
  func.func @transform_3(%arg0: i32) -> (i32, i32) {
    %c0_i32 = arith.constant 0 : i32
    %c0_i32_0 = arith.constant 0 : i32
    return %arg0, %c0_i32 : i32, i32
  }
}

</mosaic_0001>

<bundles_post_ra>
// kernel: tpu_custom_call.1
= control target key start
LH: loop header
LB: loop body
LE: loop exit
PB: predicated region body
PF: predicated region fallthrough
CT: control target
= control target key end

     0   :  { %8 = vsyncpa [#allocation3], 0  ;;  %s519_s0 = inlined_call_operand.hbm [shape: bf16[8,16], index: 0, kind: input, shape index: {}]   ;;  %s520_s1 = inlined_call_operand.hbm [shape: bf16[3,128,128], index: 1, kind: input, shape index: {}]   ;;  %s521_s2 = inlined_call_operand.hbm [shape: f32[3,1,128], index: 2, kind: input, shape index: {}]   ;;  %s522_s3 = inlined_call_operand.hbm [shape: f32[8,128], index: 3, kind: output, shape index: {}]  }
   0x1   :  { %9 = vsyncpa [#allocation6], 0  ;;  %s26_s14 = sshll.u32 %s520_s1, 4  ;;  %s27_s14 = int_to_ptr.hbm [resolvable:$true] %s26_s14 }
   0x2   :  { %10 = vsyncpa [#allocation4], 0  ;;  %s479_s15 = smov [#allocation5]   ;;  %s16_s19 = sshll.u32 %s519_s0, 4  ;;  %s17_s19 = int_to_ptr.hbm [resolvable:$true] %s16_s19 }
   0x3   :  { %s28_s16 = sshll.u32 %s479_s15, 4  ;;  %s480_s20 = smov 64   ;;  %s29_s16 = int_to_ptr.vmem [resolvable:$true] %s28_s16 }
   0x4   :  { %s481_s21 = smov 4   ;;  %s482_s22 = smov [#allocation2]  }
   0x5   :  { %34 = dma.hbm_to_vmem [thread:$0]  %s27_s14, 3072, %s29_s16, [#allocation6], %s480_s20, %s480_s20, %s481_s21  }
   0x6   :  { %s18_s23 = sshll.u32 %s482_s22, 4  ;;  %s39_s26 = sshll.u32 %s521_s2, 4  ;;  %s19_s23 = int_to_ptr.vmem [resolvable:$true] %s18_s23  ;;  %s40_s26 = int_to_ptr.hbm [resolvable:$true] %s39_s26 }
   0x7   :  { %21 = dma.hbm_to_vmem [thread:$0]  %s17_s19, 64, %s19_s23, [#allocation3]  }
   0x8   :  { %s483_s1 = smov [#allocation7]   ;;  %s484_s28 = smov 16  }
   0x9   :  { %s41_s27 = sshll.u32 %s483_s1, 4  ;;  %s485_s29 = smov 1   ;;  %s42_s27 = int_to_ptr.vmem [resolvable:$true] %s41_s27 }
   0xa   :  { %47 = dma.hbm_to_vmem [thread:$0]  %s40_s26, 48, %s42_s27, [#allocation6], %s484_s28, %s484_s28, %s485_s29  }
   0xb   :  { %473 = dma.done.wait [#allocation3], 64  }
   0xc   :  { %474 = vsyncadd [#allocation3], 4294967232 }
   0xd   :  { %475 = dma.done.wait [#allocation6], 3120  }
   0xe   :  { %476 = vsyncadd [#allocation6], 4294964176  ;;  %v349_v0 = vld [vmem:[#allocation5] sm:$0xff]  ;;  %v357_v1 = vld [vmem:[#allocation5 + $0x78] sm:$0xff]  ;;  %vm74_vm0 = vcmask 130048   ;;  %s486_s0 = smov [#allocation8]  }
   0xf   :  { %85 = vmatpush.bf16.msra.mxu0 %v349_v0  ;;  %v61_v2 = vld [vmem:[#allocation2] sm:$0xf]  ;;  %163 = vmatpush.bf16.msra.mxu1 %v357_v1  ;;  %v356_v3 = vld [vmem:[#allocation5 + $0x70] sm:$0xff]  ;;  %v355_v4 = vld [vmem:[#allocation5 + $0x68] sm:$0xff]  ;;  %s267_s2 = sshll.u32 %s486_s0, 4  ;;  %s269_s5 = sshll.u32 %s522_s3, 4  ;;  %s268_s2 = int_to_ptr.vmem [resolvable:$true] %s267_s2  ;;  %s270_s5 = int_to_ptr.hbm [resolvable:$true] %s269_s5 }
  0x10   :  { %v354_v5 = vld [vmem:[#allocation5 + $0x60] sm:$0xff]  ;;  %v353_v6 = vld [vmem:[#allocation5 + $0x58] sm:$0xff]  ;;  %v352_v7 = vld [vmem:[#allocation5 + $0x50] sm:$0xff] }
  0x11   :  { %v351_v8 = vld [vmem:[#allocation5 + $0x48] sm:$0xff]  ;;  %v350_v9 = vld [vmem:[#allocation5 + $0x40] sm:$0xff]  ;;  %v365_v10 = vld [vmem:[#allocation5 + $0xb8] sm:$0xff] }
  0x12   :  { %284 = vmatmul.msk.bf16.vlgmr.msra.gmra.mxu0 %vm74_vm0, %v61_v2  ;;  %248 = vmatpush.bf16.msra.mxu2 %v365_v10  ;;  %v364_v11 = vld [vmem:[#allocation5 + $0xb0] sm:$0xff]  ;;  %v363_v12 = vld [vmem:[#allocation5 + $0xa8] sm:$0xff]  ;;  %v362_v13 = vld [vmem:[#allocation5 + $0xa0] sm:$0xff] }
  0x13   :  { %164 = vmatpush.bf16.msra.mxu1 %v356_v3  ;;  %v361_v14 = vld [vmem:[#allocation5 + $0x98] sm:$0xff]  ;;  %v360_v15 = vld [vmem:[#allocation5 + $0x90] sm:$0xff]  ;;  %v374_v16 = vld [vmem:[#allocation7] ss:$0 sm:$0xff] }
  0x14   :  { %v359_v22 = vld [vmem:[#allocation5 + $0x88] sm:$0xff]  ;;  %v358_v23 = vld [vmem:[#allocation5 + $0x80] sm:$0xff] }
  0x15   :  { %v375_v24 = vld [vmem:[#allocation7 + $0x1] ss:$0 sm:$0xff]  ;;  %v376_v30 = vld [vmem:[#allocation7 + $0x2] ss:$0 sm:$0xff] }
  0x16   :  { %249 = vmatpush.bf16.msra.mxu2 %v364_v11 }
  0x17   :  { %165 = vmatpush.bf16.msra.mxu1 %v355_v4 }
  0x1a   :  { %250 = vmatpush.bf16.msra.mxu2 %v363_v12 }
  0x1b   :  { %166 = vmatpush.bf16.msra.mxu1 %v354_v5 }
  0x1e   :  { %251 = vmatpush.bf16.msra.mxu2 %v362_v13 }
  0x1f   :  { %167 = vmatpush.bf16.msra.mxu1 %v353_v6 }
  0x22   :  { %252 = vmatpush.bf16.msra.mxu2 %v361_v14 }
  0x23   :  { %168 = vmatpush.bf16.msra.mxu1 %v352_v7 }
  0x26   :  { %253 = vmatpush.bf16.msra.mxu2 %v360_v15 }
  0x27   :  { %169 = vmatpush.bf16.msra.mxu1 %v351_v8 }
  0x2a   :  { %254 = vmatpush.bf16.msra.mxu2 %v359_v22 }
  0x2b   :  { %170 = vmatpush.bf16.msra.mxu1 %v350_v9 }
  0x2e   :  { %255 = vmatpush.bf16.msra.mxu2 %v358_v23 }
  0x8f   :  { %v87_v17 = vpop.f32.mrf.mxu0 }
  0x90   :  { %v88_v18 = vadd.f32 %v374_v16, %v87_v17 }
  0x92   :  { %v91_v19 = vmax.f32 %v88_v18, 0.0 }
  0x94   :  { %v92_v20 = vpack.c.bf16 %v91_v19, %v91_v19 }
  0x96   :  { %171 = vmatmul.bf16.vlgmr.msra.gmra.mxu1 %v92_v20 }
  0x97   :  { %v89_v21 = vpop.f32.mrf.mxu0 }
 0x113   :  { %v172_v25 = vpop.f32.mrf.mxu1 }
 0x114   :  { %v173_v26 = vadd.f32 %v375_v24, %v172_v25 }
 0x116   :  { %v176_v27 = vmax.f32 %v173_v26, 0.0 }
 0x118   :  { %v177_v28 = vpack.c.bf16 %v176_v27, %v176_v27 }
 0x11a   :  { %256 = vmatmul.bf16.vlgmr.msra.gmra.mxu2 %v177_v28 }
 0x11b   :  { %v174_v29 = vpop.f32.mrf.mxu1 }
 0x19d   :  { %v257_v31 = vpop.f32.mrf.mxu2 }
 0x19e   :  { %v258_v32 = vadd.f32 %v376_v30, %v257_v31 }
 0x1a0   :  { %261 = vst [vmem:[#allocation8] sm:$0xff] %v258_v32 }
 0x1a1   :  { %272 = dma.vmem_to_hbm [thread:$0]  %s268_s2, 128, %s270_s5, [#allocation4]  }
 0x1a5   :  { %v259_v33 = vpop.f32.mrf.mxu2 }
 0x1a6   :  { %477 = dma.done.wait [#allocation4], 128  }
 0x1a7   :  { %478 = vsyncadd [#allocation4], 4294967168 }
 0x1a8   :  { %277 = vsyncpa [#allocation3], 1 }
 0x1a9   :  { %278 = vsyncpa [#allocation6], 1 }
 0x1aa   :  { %279 = vsyncpa [#allocation4], 1 }

</bundles_post_ra>
